<compile_context>
chip_gen: v7x
topology: tpu7x:2x2x1
jax: 0.10.0
libtpu: 0.0.40
codegen_flags: <defaults>
</compile_context>

<pallas_src>
import functools

import jax
import jax.numpy as jnp
import numpy as np
from jax.experimental import pallas as pl
from jax.experimental.pallas import tpu as pltpu


# ---------------------------------------------------------------------------
# Kernels
# ---------------------------------------------------------------------------
def feature_transform_kernel(x_ref, w_ref, dinv_ref, xw_ref):
    """Per node-tile: xw = D^{-1/2} (X @ W), stored bf16 for the aggregation MXU."""
    xw = jnp.dot(x_ref[...], w_ref[...], preferred_element_type=jnp.float32)
    xw_ref[...] = (dinv_ref[...] * xw).astype(xw_ref.dtype)


def aggregate_kernel(kt_map_ref, kt_count_ref, a_ref, xw_ref, b_ref, dinv_ref,
                     h_ref, acc_ref, *, apply_relu):
    """acc[i,:] += A_hat[i, kt] @ XW[kt, :] over nonzero K-tiles only;
    finalize applies the row D^{-1/2} scale, bias and optional relu."""
    i = pl.program_id(0)
    k = pl.program_id(1)

    @pl.when(k == 0)
    def _():
        acc_ref[...] = jnp.zeros_like(acc_ref)

    # Only real (nonzero) adjacency tiles contribute; skipped steps also reuse
    # the previous block index via kt_map, so their DMAs are never issued.
    @pl.when(k < kt_count_ref[i])
    def _():
        acc_ref[...] += jnp.dot(a_ref[...], xw_ref[...],
                                preferred_element_type=jnp.float32)

    @pl.when(k == pl.num_programs(1) - 1)
    def _():
        h = dinv_ref[...] * acc_ref[...] + b_ref[...]      # f32 finalize
        if apply_relu:
            h = jnp.maximum(h, 0.0)
        h_ref[...] = h.astype(h_ref.dtype)


def pool_kernel(p_ref, h_ref, out_ref):
    """global_add_pool: pooled += P[:, k-tile] @ H2[k-tile, :] (output resident)."""
    @pl.when(pl.program_id(0) == 0)
    def _():
        out_ref[...] = jnp.zeros_like(out_ref)
    out_ref[...] += jnp.dot(p_ref[...].astype(jnp.float32), h_ref[...],
                            preferred_element_type=jnp.float32)


# ---------------------------------------------------------------------------
# Helpers
# ---------------------------------------------------------------------------
def _round_up(x, m):
    return (x + m - 1) // m * m


def _pad2(x, rows, cols, dtype):
    r, c = x.shape
    return jnp.pad(x, ((0, rows - r), (0, cols - c))).astype(dtype)


def _pick_tile(n):
    """Largest of (512, 256, 128) that still yields >=2 row tiles (megacore)."""
    for t in (512, 256, 128):
        if _round_up(n, t) // t >= 2:
            return t
    return 128


def _agg_vmem_limit(tile, f_out, out_itemsize):
    """Scoped-VMEM budget from the actual double-buffered footprint (+headroom)."""
    per_buf = (tile * tile * 2          # A_hat bf16 tile
               + tile * f_out * 2       # XW bf16 tile
               + 8 * f_out * 4          # bias (sublane padded)
               + tile * 128 * 4         # dinv (lane padded)
               + tile * f_out * out_itemsize)
    total = 2 * per_buf + tile * f_out * 4   # double buffers + f32 accumulator
    return int(min(max(2 * total, 16 * 1024 * 1024), 64 * 1024 * 1024))


def _build_graph_operands(edge_index, num_nodes, n_pad, tile):
    """Padded bf16 A_hat, D^{-1/2} vector, and per-row-tile nonzero K-tile lists."""
    src = edge_index[0].astype(jnp.int32)
    dst = edge_index[1].astype(jnp.int32)
    nrt = n_pad // tile

    # Row degree of A_hat (incoming edges incl. multiplicity + added self loop).
    deg = jnp.zeros((n_pad,), jnp.float32).at[dst].add(1.0)
    self_cnt = jnp.zeros((n_pad,), jnp.float32).at[dst].add(
        (src == dst).astype(jnp.float32))
    is_real = jnp.arange(n_pad) < num_nodes
    add_loop = is_real & (self_cnt == 0.0)
    deg = deg + add_loop.astype(jnp.float32)
    dinv = jnp.where(deg > 0.0, jax.lax.rsqrt(deg), 0.0).reshape(n_pad, 1)

    # Dense padded A_hat built straight in bf16 (0/1.. counts -> exact).
    diag = jnp.arange(n_pad, dtype=jnp.int32)
    a_hat = (jnp.zeros((n_pad, n_pad), jnp.bfloat16)
             .at[dst, src].add(jnp.ones(dst.shape, jnp.bfloat16))
             .at[diag, diag].add(add_loop.astype(jnp.bfloat16)))

    # Block-sparsity metadata: nonzero (row-tile, k-tile) mask from the edge list.
    blk_cnt = (jnp.zeros((nrt, nrt), jnp.int32)
               .at[dst // tile, src // tile].add(1))
    mask = (blk_cnt > 0) | jnp.eye(nrt, dtype=bool)   # self loops -> diag tiles
    kt_count = mask.sum(axis=1).astype(jnp.int32)                 # (nrt,)
    order = jnp.argsort(jnp.logical_not(mask), axis=1,
                        stable=True).astype(jnp.int32)            # nonzero first
    pos = jnp.arange(nrt, dtype=jnp.int32)[None, :]
    last = jnp.take_along_axis(order, (kt_count - 1)[:, None], axis=1)
    kt_map = jnp.where(pos < kt_count[:, None], order, last)      # repeat last

    return a_hat, dinv, kt_map, kt_count


# ---------------------------------------------------------------------------
# pallas_call wrappers
# ---------------------------------------------------------------------------
def _feature_transform(x, w, dinv, *, tile):
    n_pad, f_in = x.shape
    f_out = w.shape[1]
    return pl.pallas_call(
        feature_transform_kernel,
        out_shape=jax.ShapeDtypeStruct((n_pad, f_out), jnp.bfloat16),
        grid_spec=pltpu.PrefetchScalarGridSpec(
            num_scalar_prefetch=0,
            grid=(n_pad // tile,),
            in_specs=[
                pl.BlockSpec((tile, f_in), lambda i: (i, 0)),     # X / H rows
                pl.BlockSpec((f_in, f_out), lambda i: (0, 0)),    # W (resident)
                pl.BlockSpec((tile, 1), lambda i: (i, 0)),        # D^{-1/2} rows
            ],
            out_specs=pl.BlockSpec((tile, f_out), lambda i: (i, 0)),
        ),
        compiler_params=pltpu.CompilerParams(
            dimension_semantics=("parallel",)),
    )(x, w, dinv)


def _aggregate(kt_map, kt_count, a_hat, xw, b, dinv, *, out_dtype, apply_relu,
               tile):
    n_pad = a_hat.shape[0]
    f_out = xw.shape[1]
    nrt = n_pad // tile
    return pl.pallas_call(
        functools.partial(aggregate_kernel, apply_relu=apply_relu),
        out_shape=jax.ShapeDtypeStruct((n_pad, f_out), out_dtype),
        grid_spec=pltpu.PrefetchScalarGridSpec(
            num_scalar_prefetch=2,                     # kt_map, kt_count in SMEM
            grid=(nrt, nrt),
            in_specs=[
                # A_hat tile: data-dependent K-tile index (block-sparse skip)
                pl.BlockSpec((tile, tile), lambda i, k, kt, cnt: (i, kt[i, k])),
                # matching XW row tile
                pl.BlockSpec((tile, f_out), lambda i, k, kt, cnt: (kt[i, k], 0)),
                pl.BlockSpec((1, f_out), lambda i, k, kt, cnt: (0, 0)),   # bias
                pl.BlockSpec((tile, 1), lambda i, k, kt, cnt: (i, 0)),    # D^{-1/2}
            ],
            out_specs=pl.BlockSpec((tile, f_out), lambda i, k, kt, cnt: (i, 0)),
            scratch_shapes=[pltpu.VMEM((tile, f_out), jnp.float32)],
        ),
        compiler_params=pltpu.CompilerParams(
            dimension_semantics=("parallel", "arbitrary"),
            vmem_limit_bytes=_agg_vmem_limit(tile, f_out,
                                             jnp.dtype(out_dtype).itemsize),
        ),
    )(kt_map, kt_count, a_hat, xw, b, dinv)


def _global_add_pool(p, h, *, tile):
    g_pad, n_pad = p.shape
    f_out = h.shape[1]
    return pl.pallas_call(
        pool_kernel,
        out_shape=jax.ShapeDtypeStruct((g_pad, f_out), jnp.float32),
        grid_spec=pltpu.PrefetchScalarGridSpec(
            num_scalar_prefetch=0,
            grid=(n_pad // tile,),
            in_specs=[
                pl.BlockSpec((g_pad, tile), lambda k: (0, k)),
                pl.BlockSpec((tile, f_out), lambda k: (k, 0)),
            ],
            out_specs=pl.BlockSpec((g_pad, f_out), lambda k: (0, 0)),
        ),
        compiler_params=pltpu.CompilerParams(
            dimension_semantics=("arbitrary",)),
    )(p, h)


# ---------------------------------------------------------------------------
# Full forward
# ---------------------------------------------------------------------------
def gcn_forward(x, edge_index, w1, b1, w2, b2, batch, num_graphs, *, tile=None):
    """GCNModel forward: returns (H2 [N, out_dim], pooled [G, out_dim])."""
    n, in_dim = x.shape
    hid = w1.shape[1]
    out_dim = w2.shape[1]

    if tile is None:
        tile = _pick_tile(n)
    n_pad = _round_up(n, tile)
    fi = _round_up(in_dim, 128)
    fh = _round_up(hid, 128)
    fo = _round_up(out_dim, 128)
    g_pad = _round_up(max(num_graphs, 1), 8)

    bf = jnp.bfloat16
    x_p = _pad2(x, n_pad, fi, bf)
    w1_p = _pad2(w1, fi, fh, bf)
    w2_p = _pad2(w2, fh, fo, bf)
    b1_p = _pad2(b1, 1, fh, jnp.float32)
    b2_p = _pad2(b2, 1, fo, jnp.float32)

    a_hat, dinv, kt_map, kt_count = _build_graph_operands(edge_index, n, n_pad,
                                                          tile)

    # Exact one-hot pooling matrix in bf16; padded nodes map to no graph.
    # TODO(synk): for very large N, replace the dense one-hot matmul with a
    # segment-sum over H2 row tiles driven by scalar-prefetched batch ids.
    batch_p = jnp.pad(batch.astype(jnp.int32), (0, n_pad - n),
                      constant_values=-1)
    pool_p = (batch_p[None, :] ==
              jnp.arange(g_pad, dtype=jnp.int32)[:, None]).astype(bf)

    # Layer 1
    xw1 = _feature_transform(x_p, w1_p, dinv, tile=tile)
    h1 = _aggregate(kt_map, kt_count, a_hat, xw1, b1_p, dinv,
                    out_dtype=bf, apply_relu=True, tile=tile)
    # Layer 2
    xw2 = _feature_transform(h1, w2_p, dinv, tile=tile)
    h2 = _aggregate(kt_map, kt_count, a_hat, xw2, b2_p, dinv,
                    out_dtype=jnp.float32, apply_relu=False, tile=tile)
    # Readout
    pooled = _global_add_pool(pool_p, h2, tile=tile)

    return h2[:n, :out_dim], pooled[:num_graphs, :out_dim]


# ---------------------------------------------------------------------------
# Demo / self-test
# ---------------------------------------------------------------------------
if __name__ == "__main__":
    # 3 ring graphs of 96 nodes -> N=288, padded to 384 with tile=128: exercises
    # the multi-row-tile grid, zero-tile skipping (tiles (0,2)/(2,0) of A_hat
    # are empty) and padded-node handling.
    NODES_PER_GRAPH = 96
    NUM_GRAPHS = 3
    N = NODES_PER_GRAPH * NUM_GRAPHS
    INPUT_DIM, HIDDEN_DIM, OUTPUT_DIM = 8, 32, 16

    key = jax.random.PRNGKey(0)
    kx, kw1, kb1, kw2, kb2 = jax.random.split(key, 5)

    x = jax.random.normal(kx, (N, INPUT_DIM), jnp.float32)
    w1 = jax.random.normal(kw1, (INPUT_DIM, HIDDEN_DIM), jnp.float32) * 0.1
    b1 = jax.random.normal(kb1, (1, HIDDEN_DIM), jnp.float32) * 0.1
    w2 = jax.random.normal(kw2, (HIDDEN_DIM, OUTPUT_DIM), jnp.float32) * 0.1
    b2 = jax.random.normal(kb2, (1, OUTPUT_DIM), jnp.float32) * 0.1

    # undirected ring within each graph
    edges = []
    for g in range(NUM_GRAPHS):
        base = g * NODES_PER_GRAPH
        for i in range(NODES_PER_GRAPH):
            u, v = base + i, base + (i + 1) % NODES_PER_GRAPH
            edges.append((u, v))
            edges.append((v, u))
    edge_index = jnp.array(np.array(edges, dtype=np.int32).T)            # [2, E]
    batch = jnp.array(np.repeat(np.arange(NUM_GRAPHS),
                                NODES_PER_GRAPH).astype(np.int32))       # [N]

    h2, pooled = gcn_forward(x, edge_index, w1, b1, w2, b2, batch, NUM_GRAPHS)
    jax.block_until_ready((h2, pooled))

    # float64 numpy reference (exact GCN semantics)
    src_np, dst_np = np.asarray(edge_index)
    a_np = np.zeros((N, N), np.float64)
    np.add.at(a_np, (dst_np, src_np), 1.0)
    diag = np.diagonal(a_np).copy()
    a_np[np.arange(N), np.arange(N)] += np.where(diag > 0.0, 0.0, 1.0)
    deg = a_np.sum(axis=1)
    dinv_np = np.where(deg > 0, 1.0 / np.sqrt(deg), 0.0)
    a_norm = dinv_np[:, None] * a_np * dinv_np[None, :]

    x_np = np.asarray(x, np.float64)
    w1_np, b1_np = np.asarray(w1, np.float64), np.asarray(b1, np.float64)
    w2_np, b2_np = np.asarray(w2, np.float64), np.asarray(b2, np.float64)
    h1_ref = np.maximum(a_norm @ (x_np @ w1_np) + b1_np, 0.0)
    h2_ref = a_norm @ (h1_ref @ w2_np) + b2_np
    pool_np = np.zeros((NUM_GRAPHS, N), np.float64)
    pool_np[np.asarray(batch), np.arange(N)] = 1.0
    pooled_ref = pool_np @ h2_ref

    assert h2.shape == (N, OUTPUT_DIM) and pooled.shape == (NUM_GRAPHS, OUTPUT_DIM)
    # bf16 MXU inputs with f32 accumulation -> bf16-level tolerances
    h2_err = np.max(np.abs(np.asarray(h2, np.float64) - h2_ref))
    pooled_err = np.max(np.abs(np.asarray(pooled, np.float64) - pooled_ref))
    assert np.allclose(np.asarray(h2, np.float64), h2_ref,
                       atol=3e-2, rtol=3e-2), h2_err
    assert np.allclose(np.asarray(pooled, np.float64), pooled_ref,
                       atol=1e-1, rtol=3e-2), pooled_err

    print("KERNEL_OK")
</pallas_src>

<mosaic_0001>
module attributes {stable_mosaic.version = 11 : i64} {
  func.func @feature_transform_kernel(%arg0: i32, %arg1: memref<256x128xbf16, #tpu.memory_space<vmem>>, %arg2: memref<128x128xbf16, #tpu.memory_space<vmem>>, %arg3: memref<256x1xf32, #tpu.memory_space<vmem>>, %arg4: memref<256x128xbf16, #tpu.memory_space<vmem>>) attributes {dimension_semantics = [#tpu.dimension_semantics<parallel>], iteration_bounds = array<i64: 2>, scalar_prefetch = 0 : i64, scratch_operands = 0 : i64, tpu.core_type = #tpu.core_type<tc>, window_params = [{transform_indices = @transform_0, window_bounds = array<i64: 256, 128>}, {pipeline_mode = #tpu.pipeline_mode<synchronous>, transform_indices = @transform_1, window_bounds = array<i64: 128, 128>}, {transform_indices = @transform_2, window_bounds = array<i64: 256, 1>}, {transform_indices = @transform_3, window_bounds = array<i64: 256, 128>}]} {
    %c0 = arith.constant 0 : index
    %c0_0 = arith.constant 0 : index
    %0 = vector.load %arg1[%c0, %c0_0] : memref<256x128xbf16, #tpu.memory_space<vmem>>, vector<256x128xbf16>
    %c0_1 = arith.constant 0 : index
    %c0_2 = arith.constant 0 : index
    %1 = vector.load %arg2[%c0_1, %c0_2] : memref<128x128xbf16, #tpu.memory_space<vmem>>, vector<128x128xbf16>
    %cst = arith.constant dense<0.000000e+00> : vector<256x128xf32>
    %2 = tpu.matmul %0, %1, %cst {dimension_numbers = #tpu.dot_dimension_numbers<[1], [0], [0], [1], [0, 0, 1, 1], [], []>} : vector<256x128xbf16>, vector<128x128xbf16>, vector<256x128xf32> -> vector<256x128xf32>
    %c0_3 = arith.constant 0 : index
    %c0_4 = arith.constant 0 : index
    %3 = vector.load %arg3[%c0_3, %c0_4] : memref<256x1xf32, #tpu.memory_space<vmem>>, vector<256x1xf32>
    %4 = vector.broadcast %3 : vector<256x1xf32> to vector<256x128xf32>
    %5 = arith.mulf %4, %2 : vector<256x128xf32>
    %6 = arith.truncf %5 : vector<256x128xf32> to vector<256x128xbf16>
    %c0_5 = arith.constant 0 : index
    %c0_6 = arith.constant 0 : index
    %7 = vector.load %arg4[%c0_5, %c0_6] : memref<256x128xbf16, #tpu.memory_space<vmem>>, vector<256x128xbf16>
    tpu.vector_store %arg4[%c0_5, %c0_6], %6 {strides = array<i32>} : memref<256x128xbf16, #tpu.memory_space<vmem>>, vector<256x128xbf16>,
    return
  }
  func.func @transform_0(%arg0: i32) -> (i32, i32) {
    %c0_i32 = arith.constant 0 : i32
    %c0_i32_0 = arith.constant 0 : i32
    return %arg0, %c0_i32 : i32, i32
  }
  func.func @transform_1(%arg0: i32) -> (i32, i32) {
    %c0_i32 = arith.constant 0 : i32
    %c0_i32_0 = arith.constant 0 : i32
    %c0_i32_1 = arith.constant 0 : i32
    return %c0_i32, %c0_i32_0 : i32, i32
  }
  func.func @transform_2(%arg0: i32) -> (i32, i32) {
    %c0_i32 = arith.constant 0 : i32
    %c0_i32_0 = arith.constant 0 : i32
    return %arg0, %c0_i32 : i32, i32
  }
  func.func @transform_3(%arg0: i32) -> (i32, i32) {
    %c0_i32 = arith.constant 0 : i32
    %c0_i32_0 = arith.constant 0 : i32
    return %arg0, %c0_i32 : i32, i32
  }
}

</mosaic_0001>

<bundles_post_ra>
// kernel: tpu_custom_call.1
= control target key start
LH: loop header
LB: loop body
LE: loop exit
PB: predicated region body
PF: predicated region fallthrough
CT: control target
= control target key end

     0   :  { %8 = vsyncpa [#allocation3], 0  ;;  %s1699_s0 = inlined_call_operand.vmem [shape: bf16[512,128], index: 0, kind: input, shape index: {}]   ;;  %s1700_s1 = inlined_call_operand.vmem [shape: bf16[128,128], index: 1, kind: input, shape index: {}]   ;;  %s1701_s2 = inlined_call_operand.vmem [shape: f32[512,1], index: 2, kind: input, shape index: {}]   ;;  %s1702_s3 = inlined_call_operand.hbm [shape: bf16[512,128], index: 3, kind: output, shape index: {}]  }
   0x1   :  { %10 = vsyncpa [#allocation3 + $0x1], 0  ;;  %s1462_s12 = smov 0   ;;  %s1464_s13 = smov 0  }
   0x2   :  { %s1466_s14 = smov 0   ;;  %s1468_s15 = smov 0  }
   0x3 LB: > { %s1483_s16 = sadd.s32 4294967295, %s1436_s15   ;;  %s1020_s17 = sadd.s32 4294967294, %s1436_s15   ;;  %s1436_s15 = sphi %s1468_s15, %s1708_s15   ;;  %s1432_s14 = sphi %s1466_s14, %s1707_s14   ;;  %s1428_s13 = sphi %s1464_s13, %s1706_s13   ;;  %s1424_s12 = sphi %s1462_s12, %s1705_s12  }
   0x4   : > { %s1487_s18 = sadd.s32 1, %s1436_s15   ;;  %s96_s19 = sadd.s32 1, %s1432_s14 }
   0x5   : > { %s93_s20 = ssub.s32 %s1436_s15, %s1487_s18  ;;  %p106_p0 = scmp.ne.s32.totalorder %s1432_s14, %s1428_s13 }
   0x6   : > { %p94_p1 = scmp.eq.s32.totalorder %s93_s20, 0  ;;  %p107_p2 = scmp.eq.s32.totalorder %s1483_s16, 1 }
   0x7   : > { %p112_p3 = scmp.ne.s32.totalorder %s1428_s13, %s1424_s12  ;;  %p113_p4 = scmp.eq.s32.totalorder %s1020_s17, 1 }
   0x8   : > { %s1498_s21 = scalar_select %p94_p1, %s1432_s14, %s96_s19  }
   0x9   : > { %p1500_p5 = por %p107_p2, %p106_p0  ;;  %p1504_p6 = por %p113_p4, %p112_p3 }
   0xa   : > { %p1023_p7 = scmp.ge.s32.totalorder %s1436_s15, 1  ;;  %p152_p8 = scmp.lt.s32.totalorder %s1436_s15, 3 }
   0xc   : > { %p153_p9 = pnand %p1023_p7, %p152_p8 }
   0xd   : > { %v1350_v0 = vld [vmem:[%s1700_s1] sm:$0xff] (!%p153_p9)   ;;  %v1351_v1 = vld [vmem:[%s1700_s1 + $0x8] sm:$0xff] (!%p153_p9)   ;;  %v1438_v2 = vmov (!%p153_p9), 0   ;;  %s1025_s28 = sshll.u32 (!%p153_p9), %s1483_s16, 5  ;;  %v1352_v3 = vld [vmem:[%s1700_s1 + $0x10] sm:$0xff] (!%p153_p9)  }
   0xe   : > { %156 = sbr.rel (%p153_p9) target bundleno = 305 (0x131), region = 32  ;;  %1349 = vset.pattern.permute.xlu1 (!%p153_p9), %v1438_v2  ;;  %1348 = vset.pattern.permute.xlu0 (!%p153_p9), %v1438_v2  ;;  %p182_p10 = scmp.lt.s32.totalorder (!%p153_p9), %s1025_s28, 63  ;;  %v1353_v4 = vld [vmem:[%s1700_s1 + $0x18] sm:$0xff] (!%p153_p9)   ;;  %v1354_v11 = vld [vmem:[%s1700_s1 + $0x20] sm:$0xff] (!%p153_p9)   ;;  %v1355_v14 = vld [vmem:[%s1700_s1 + $0x28] sm:$0xff] (!%p153_p9)  }
   0xf   : > { %1242 = vmatprep.subr.bf16.mxu0 (!%p153_p9), %v1350_v0  ;;  %1290 = vmatprep.subr.bf16.mxu1 (!%p153_p9), %v1350_v0  ;;  %v1356_v17 = vld [vmem:[%s1700_s1 + $0x30] sm:$0xff] (!%p153_p9)   ;;  %v1357_v20 = vld [vmem:[%s1700_s1 + $0x38] sm:$0xff] (!%p153_p9)  }
  0x10   : > { %1243 = vmatpush3.bf16.msra.mxu0 (!%p153_p9), %v1350_v0  ;;  %1298 = vmatpush3.bf16.msra.mxu1 (!%p153_p9), %v1350_v0 }
  0x11   : > { %1244 = vmatprep.subr.bf16.mxu0 (!%p153_p9), %v1351_v1  ;;  %1291 = vmatprep.subr.bf16.mxu1 (!%p153_p9), %v1351_v1 }
  0x14   : > { %1245 = vmatpush3.bf16.msra.mxu0 (!%p153_p9), %v1351_v1  ;;  %1299 = vmatpush3.bf16.msra.mxu1 (!%p153_p9), %v1351_v1 }
  0x15   : > { %s1710_s28 = smov (!%p182_p10, %s1025_s28), 63  ;;  %1246 = vmatprep.subr.bf16.mxu0 %v1352_v3  ;;  %1292 = vmatprep.subr.bf16.mxu1 %v1352_v3 }
  0x16   : > { %s1028_s4 = sshll.u32 %s1710_s28, 3  ;;  %s1026_s8 = sshll.u32 %s1710_s28, 2 }
  0x17   : > { %s1523_s7 = scalar_lea.vmem %s1701_s2, %s1028_s4  ;;  %s1533_s19 = scalar_lea.vmem %s1699_s0, %s1026_s8 }
  0x18   : > { %v550_v5 = vld [vmem:[%s1523_s7 + $0x10] sm:$0xff]  ;;  %v548_v6 = vld [vmem:[%s1523_s7] sm:$0xff]  ;;  %v551_v7 = vld [vmem:[%s1523_s7 + $0x18] sm:$0xff]  ;;  %1247 = vmatpush3.bf16.msra.mxu0 %v1352_v3  ;;  %1300 = vmatpush3.bf16.msra.mxu1 %v1352_v3  ;;  %s178_s4 = sand.u32 1, %s1428_s13  }
  0x19   : > { %592 = vperm.xlu1 %1349, %v550_v5   ;;  %582 = vperm.xlu0 %1348, %v548_v6   ;;  %v549_v8 = vld [vmem:[%s1523_s7 + $0x8] sm:$0xff]  ;;  %v1358_v9 = vld [vmem:[%s1533_s19] sm:$0xff]   ;;  %v555_v15 = vld [vmem:[%s1523_s7 + $0x38] sm:$0xff]  ;;  %s1024_s5 = sshll.u32 %s178_s4, 7  ;;  %s1658_s11 = scalar_lea.sflag [#allocation3], %s178_s4 }
  0x1a   : > { %v1359_v10 = vld [vmem:[%s1533_s19 + $0x40] sm:$0xff]   ;;  %1248 = vmatprep.subr.bf16.mxu0 %v1353_v4  ;;  %1293 = vmatprep.subr.bf16.mxu1 %v1353_v4  ;;  %v553_v12 = vld [vmem:[%s1523_s7 + $0x28] sm:$0xff]  ;;  %v554_v16 = vld [vmem:[%s1523_s7 + $0x30] sm:$0xff]  ;;  %s1618_s6 = scalar_lea.vmem [#allocation2], %s1024_s5 }
  0x1b   : > { %v552_v13 = vld [vmem:[%s1523_s7 + $0x20] sm:$0xff]  ;;  %1258 = vmatprep.mubr.bf16.mxu0 %v1358_v9  ;;  %1274 = vmatprep.mubr.bf16.mxu1 %v1359_v10  ;;  %v557_v18 = vld [vmem:[%s1523_s7 + $0x48] sm:$0xff]  ;;  %v559_v21 = vld [vmem:[%s1523_s7 + $0x58] sm:$0xff]  ;;  %s946_s8 = sshll.u32 %s1618_s6, 4  ;;  %s1650_s8 = int_to_ptr.vmem [resolvable:$true] %s946_s8 }
  0x1c   : > { %1249 = vmatpush3.bf16.msra.mxu0 %v1353_v4  ;;  %1301 = vmatpush3.bf16.msra.mxu1 %v1353_v4  ;;  %v556_v19 = vld [vmem:[%s1523_s7 + $0x40] sm:$0xff]  ;;  %v558_v22 = vld [vmem:[%s1523_s7 + $0x50] sm:$0xff]  ;;  %v1360_v23 = vld [vmem:[%s1533_s19 + $0x8] sm:$0xff]   ;;  %s1374_s17 = scalar_lea.vmem %s1650_s8, 2048 }
  0x1d   : > { %597 = vperm.xlu1 %1349, %v551_v7   ;;  %587 = vperm.xlu0 %1348, %v549_v8   ;;  %v1361_v24 = vld [vmem:[%s1533_s19 + $0x48] sm:$0xff]   ;;  %v560_v26 = vld [vmem:[%s1523_s7 + $0x60] sm:$0xff]  ;;  %v1362_v27 = vld [vmem:[%s1533_s19 + $0x10] sm:$0xff]   ;;  %p1375_p11 = scmp.ne.s32.totalorder %s1650_s8, %s1374_s17 }
  0x1e   : > { %1250 = vmatprep.subr.bf16.mxu0 %v1354_v11  ;;  %1294 = vmatprep.subr.bf16.mxu1 %v1354_v11  ;;  %v561_v25 = vld [vmem:[%s1523_s7 + $0x68] sm:$0xff]  ;;  %v1363_v28 = vld [vmem:[%s1533_s19 + $0x50] sm:$0xff]   ;;  %v563_v29 = vld [vmem:[%s1523_s7 + $0x78] sm:$0xff] }
  0x1f   : > { %v562_v30 = vld [vmem:[%s1523_s7 + $0x70] sm:$0xff]  ;;  %v1364_v31 = vld [vmem:[%s1533_s19 + $0x18] sm:$0xff]   ;;  %v565_v33 = vld [vmem:[%s1523_s7 + $0x88] sm:$0xff]  ;;  %p1376_p12 = pnand %p1375_p11, %p1500_p5 }
  0x20   : > { %1251 = vmatpush3.bf16.msra.mxu0 %v1354_v11  ;;  %1302 = vmatpush3.bf16.msra.mxu1 %v1354_v11  ;;  %v1365_v32 = vld [vmem:[%s1533_s19 + $0x58] sm:$0xff]   ;;  %v564_v34 = vld [vmem:[%s1523_s7 + $0x80] sm:$0xff]  ;;  %v566_v38 = vld [vmem:[%s1523_s7 + $0x90] sm:$0xff] }
  0x21   : > { %607 = vperm.xlu1 %1349, %v553_v12   ;;  %602 = vperm.xlu0 %1348, %v552_v13   ;;  %v1366_v35 = vld [vmem:[%s1533_s19 + $0x20] sm:$0xff]   ;;  %v567_v37 = vld [vmem:[%s1523_s7 + $0x98] sm:$0xff]  ;;  %v1368_v39 = vld [vmem:[%s1533_s19 + $0x28] sm:$0xff]   ;;  %p1377_p13 = pneg %p1376_p12 }
  0x22   : > { %1252 = vmatprep.subr.bf16.mxu0 %v1355_v14  ;;  %1295 = vmatprep.subr.bf16.mxu1 %v1355_v14  ;;  %v1367_v36 = vld [vmem:[%s1533_s19 + $0x60] sm:$0xff]   ;;  %v1369_v40 = vld [vmem:[%s1533_s19 + $0x68] sm:$0xff]   ;;  %v1370_v43 = vld [vmem:[%s1533_s19 + $0x30] sm:$0xff]  }
  0x23   : > { %v569_v41 = vld [vmem:[%s1523_s7 + $0xa8] sm:$0xff]  ;;  %v568_v42 = vld [vmem:[%s1523_s7 + $0xa0] sm:$0xff]  ;;  %v1371_v44 = vld [vmem:[%s1533_s19 + $0x70] sm:$0xff]  }
  0x24   : > { %1253 = vmatpush3.bf16.msra.mxu0 %v1355_v14  ;;  %1303 = vmatpush3.bf16.msra.mxu1 %v1355_v14  ;;  %v571_v45 = vld [vmem:[%s1523_s7 + $0xb8] sm:$0xff]  ;;  %v570_v46 = vld [vmem:[%s1523_s7 + $0xb0] sm:$0xff]  ;;  %v573_v49 = vld [vmem:[%s1523_s7 + $0xc8] sm:$0xff] }
  0x25   : > { %617 = vperm.xlu1 %1349, %v555_v15   ;;  %612 = vperm.xlu0 %1348, %v554_v16   ;;  %v1372_v47 = vld [vmem:[%s1533_s19 + $0x38] sm:$0xff]   ;;  %v572_v50 = vld [vmem:[%s1523_s7 + $0xc0] sm:$0xff]  ;;  %v574_v52 = vld [vmem:[%s1523_s7 + $0xd0] sm:$0xff] }
  0x26   : > { %1254 = vmatprep.subr.bf16.mxu0 %v1356_v17  ;;  %1296 = vmatprep.subr.bf16.mxu1 %v1356_v17  ;;  %v1373_v48 = vld [vmem:[%s1533_s19 + $0x78] sm:$0xff]   ;;  %v577_v53 = vld [vmem:[%s1523_s7 + $0xe8] sm:$0xff]  ;;  %v576_v54 = vld [vmem:[%s1523_s7 + $0xe0] sm:$0xff]  ;;  %s1439_s19 = smov [#allocation2]  }
  0x27   : > { %v575_v51 = vld [vmem:[%s1523_s7 + $0xd8] sm:$0xff]  ;;  %v578_v56 = vld [vmem:[%s1523_s7 + $0xf0] sm:$0xff]  ;;  %s1378_s20 = sshll.u32 %s1439_s19, 4  ;;  %s1379_s20 = int_to_ptr.vmem [resolvable:$false] %s1378_s20 }
  0x28   : > { %1255 = vmatpush3.bf16.msra.mxu0 %v1356_v17  ;;  %1304 = vmatpush3.bf16.msra.mxu1 %v1356_v17  ;;  %v579_v55 = vld [vmem:[%s1523_s7 + $0xf8] sm:$0xff]  ;;  %s1122_s7 = sshll.u32 %s1483_s16, 11  ;;  %s1380_s24 = scalar_lea.vmem %s1379_s20, 4096 }
  0x29   : > { %627 = vperm.xlu1 %1349, %v557_v18   ;;  %622 = vperm.xlu0 %1348, %v556_v19   ;;  %s1648_s10 = scalar_lea.hbm %s1702_s3, %s1122_s7  ;;  %p1381_p0 = scmp.lt.s32.totalorder %s1650_s8, %s1379_s20 }
  0x2a   : > { %1256 = vmatprep.subr.bf16.mxu0 %v1357_v20  ;;  %1297 = vmatprep.subr.bf16.mxu1 %v1357_v20  ;;  %p1382_p1 = scmp.lt.s32.totalorder %s1380_s24, %s1374_s17 }
  0x2c   : > { %1257 = vmatpush3.bf16.msra.mxu0 %v1357_v20  ;;  %1305 = vmatpush3.bf16.msra.mxu1 %v1357_v20  ;;  %p1383_p2 = por %p1382_p1, %p1381_p0 }
  0x2d   : > { %637 = vperm.xlu1 %1349, %v559_v21   ;;  %632 = vperm.xlu0 %1348, %v558_v22  }
  0x2e   : > { %p1384_p3 = pnand %p1383_p2, %p1377_p13 }
  0x2f   : > { %1259 = vmatmul.mubr.bf16.vlgmr.msra.gmra.mrb[0].mxu0 %v1360_v23  ;;  %1275 = vmatmul.mubr.bf16.vlgmr.msra.gmra.mrb[0].mxu1 %v1361_v24 }
  0x30   : > { %1262 = vmatprep.mubr.bf16.mxu0 %v1362_v27  ;;  %1278 = vmatprep.mubr.bf16.mxu1 %v1363_v28 }
  0x31   : > { %647 = vperm.xlu1 %1349, %v561_v25   ;;  %642 = vperm.xlu0 %1348, %v560_v26  }
  0x35   : > { %657 = vperm.xlu1 %1349, %v563_v29   ;;  %652 = vperm.xlu0 %1348, %v562_v30  }
  0x37   : > { %1263 = vmatmul.mubr.bf16.gmra.mrb[4].mxu0 %v1364_v31  ;;  %1279 = vmatmul.mubr.bf16.gmra.mrb[4].mxu1 %v1365_v32 }
  0x38   : > { %1266 = vmatprep.mubr.bf16.mxu0 %v1366_v35  ;;  %1282 = vmatprep.mubr.bf16.mxu1 %v1367_v36 }
  0x39   : > { %667 = vperm.xlu1 %1349, %v565_v33   ;;  %662 = vperm.xlu0 %1348, %v564_v34  }
  0x3d   : > { %677 = vperm.xlu1 %1349, %v567_v37   ;;  %672 = vperm.xlu0 %1348, %v566_v38  }
  0x3f   : > { %1267 = vmatmul.mubr.bf16.gmra.mrb[8].mxu0 %v1368_v39  ;;  %1283 = vmatmul.mubr.bf16.gmra.mrb[8].mxu1 %v1369_v40 }
  0x40   : > { %1270 = vmatprep.mubr.bf16.mxu0 %v1370_v43  ;;  %1286 = vmatprep.mubr.bf16.mxu1 %v1371_v44 }
  0x41   : > { %687 = vperm.xlu1 %1349, %v569_v41   ;;  %682 = vperm.xlu0 %1348, %v568_v42  }
  0x45   : > { %697 = vperm.xlu1 %1349, %v571_v45   ;;  %692 = vperm.xlu0 %1348, %v570_v46  }
  0x47   : > { %1271 = vmatmul.mubr.bf16.gmra.mrb[12].mxu0 %v1372_v47  ;;  %1287 = vmatmul.mubr.bf16.gmra.mrb[12].mxu1 %v1373_v48 }
  0x49   : > { %707 = vperm.xlu1 %1349, %v573_v49   ;;  %702 = vperm.xlu0 %1348, %v572_v50  }
  0x4d   : > { %717 = vperm.xlu1 %1349, %v575_v51   ;;  %712 = vperm.xlu0 %1348, %v574_v52  }
  0x51   : > { %727 = vperm.xlu1 %1349, %v577_v53   ;;  %722 = vperm.xlu0 %1348, %v576_v54  }
  0x55   : > { %737 = vperm.xlu1 %1349, %v579_v55   ;;  %732 = vperm.xlu0 %1348, %v578_v56  }
  0x98   : > { %v593_v57 = vpop.permute.xlu1 %592  ;;  %v583_v58 = vpop.permute.xlu0 %582 }
  0x9c   : > { %v598_v59 = vpop.permute.xlu1 %597  ;;  %v588_v60 = vpop.permute.xlu0 %587 }
  0xa0   : > { %v1593_v61 = vpop.permute.xlu1 %607  ;;  %v603_v62 = vpop.permute.xlu0 %602 }
  0xa4   : > { %v618_v63 = vpop.permute.xlu1 %617  ;;  %v613_v0 = vpop.permute.xlu0 %612 }
  0xa8   : > { %v1595_v1 = vpop.permute.xlu1 %627  ;;  %v1597_v2 = vpop.permute.xlu0 %622 }
  0xac   : > { %v1599_v3 = vpop.permute.xlu1 %637  ;;  %v1601_v4 = vpop.permute.xlu0 %632 }
  0xb0   : > { %v1603_v5 = vpop.permute.xlu1 %647  ;;  %v1605_v6 = vpop.permute.xlu0 %642 }
  0xb4   : > { %v1607_v7 = vpop.permute.xlu1 %657  ;;  %v1609_v8 = vpop.permute.xlu0 %652 }
  0xb8   : > { %v668_v9 = vpop.permute.xlu1 %667  ;;  %v663_v10 = vpop.permute.xlu0 %662 }
  0xbc   : > { %v678_v11 = vpop.permute.xlu1 %677  ;;  %v673_v12 = vpop.permute.xlu0 %672 }
  0xc0   : > { %v688_v13 = vpop.permute.xlu1 %687  ;;  %v683_v14 = vpop.permute.xlu0 %682 }
  0xc4   : > { %v698_v15 = vpop.permute.xlu1 %697  ;;  %v693_v16 = vpop.permute.xlu0 %692 }
  0xc8   : > { %v1612_v17 = vpop.permute.xlu1 %707  ;;  %v1614_v18 = vpop.permute.xlu0 %702 }
  0xcc   : > { %v718_v39 = vpop.permute.xlu1 %717  ;;  %v713_v40 = vpop.permute.xlu0 %712 }
 0x102   : > { %v1260_v19 = vpop.f32.mrb[0].mxu0  ;;  %v1276_v20 = vpop.f32.mrb[0].mxu1 }
 0x103   : > { %v421_v21 = vpop.f32.mrb[1].mxu0  ;;  %v485_v22 = vpop.f32.mrb[1].mxu1  ;;  %v742_v25 = vmul.f32 %v1260_v19, %v593_v57  ;;  %v758_v26 = vmul.f32 %v1276_v20, %v673_v12 }
 0x104   : > { %v1261_v23 = vpop.f32.mrb[2].mxu0  ;;  %v1277_v24 = vpop.f32.mrb[2].mxu1  ;;  %v740_v31 = vmul.f32 %v583_v58, %v421_v21  ;;  %v756_v32 = vmul.f32 %v663_v10, %v485_v22 }
 0x105   : > { %v743_v27 = vmul.f32 %v1261_v23, %v598_v59  ;;  %v759_v28 = vmul.f32 %v1277_v24, %v678_v11  ;;  %v424_v29 = vpop.f32.mrb[3].mxu0  ;;  %v488_v30 = vpop.f32.mrb[3].mxu1 }
 0x106   : > { %v741_v33 = vmul.f32 %v588_v60, %v424_v29  ;;  %v757_v34 = vmul.f32 %v668_v9, %v488_v30  ;;  %v728_v9 = vpop.permute.xlu1 %727 }
 0x107   : > { %v1131_v35 = vpack.c.bf16 %v743_v27, %v742_v25  ;;  %v1171_v36 = vpack.c.bf16 %v759_v28, %v758_v26 }
 0x108   : > { %v1126_v37 = vpack.c.bf16 %v741_v33, %v740_v31  ;;  %v1166_v38 = vpack.c.bf16 %v757_v34, %v756_v32 }
 0x109   : > { %1203 = vst [vmem:[%s1618_s6 + $0x8] sm:$0xff] %v1131_v35   ;;  %1211 = vst [vmem:[%s1618_s6 + $0x48] sm:$0xff] %v1171_v36  }
 0x10a   : > { %1127 = vst [vmem:[%s1618_s6] sm:$0xff] %v1126_v37   ;;  %1210 = vst [vmem:[%s1618_s6 + $0x40] sm:$0xff] %v1166_v38   ;;  %v1264_v41 = vpop.f32.mrb[4].mxu0  ;;  %v1280_v42 = vpop.f32.mrb[4].mxu1 }
 0x10b   : > { %v437_v43 = vpop.f32.mrb[5].mxu0  ;;  %v501_v44 = vpop.f32.mrb[5].mxu1  ;;  %v746_v47 = vmul.f32 %v1264_v41, %v613_v0  ;;  %v762_v48 = vmul.f32 %v1280_v42, %v693_v16 }
 0x10c   : > { %v1265_v45 = vpop.f32.mrb[6].mxu0  ;;  %v1281_v46 = vpop.f32.mrb[6].mxu1  ;;  %v744_v53 = vmul.f32 %v603_v62, %v437_v43  ;;  %v760_v54 = vmul.f32 %v683_v14, %v501_v44 }
 0x10d   : > { %v747_v49 = vmul.f32 %v1265_v45, %v618_v63  ;;  %v763_v50 = vmul.f32 %v1281_v46, %v698_v15  ;;  %v440_v51 = vpop.f32.mrb[7].mxu0  ;;  %v504_v52 = vpop.f32.mrb[7].mxu1 }
 0x10e   : > { %v745_v55 = vmul.f32 %v1593_v61, %v440_v51  ;;  %v761_v56 = vmul.f32 %v688_v13, %v504_v52  ;;  %v723_v0 = vpop.permute.xlu0 %722 }
 0x10f   : > { %v1141_v57 = vpack.c.bf16 %v747_v49, %v746_v47  ;;  %v1181_v58 = vpack.c.bf16 %v763_v50, %v762_v48 }
 0x110   : > { %v1136_v59 = vpack.c.bf16 %v745_v55, %v744_v53  ;;  %v1176_v60 = vpack.c.bf16 %v761_v56, %v760_v54 }
 0x111   : > { %1205 = vst [vmem:[%s1618_s6 + $0x18] sm:$0xff] %v1141_v57   ;;  %1213 = vst [vmem:[%s1618_s6 + $0x58] sm:$0xff] %v1181_v58  }
 0x112   : > { %1204 = vst [vmem:[%s1618_s6 + $0x10] sm:$0xff] %v1136_v59   ;;  %1212 = vst [vmem:[%s1618_s6 + $0x50] sm:$0xff] %v1176_v60   ;;  %v1268_v63 = vpop.f32.mrb[8].mxu0  ;;  %v1284_v10 = vpop.f32.mrb[8].mxu1 }
 0x113   : > { %v453_v11 = vpop.f32.mrb[9].mxu0  ;;  %v517_v12 = vpop.f32.mrb[9].mxu1  ;;  %v750_v14 = vmul.f32 %v1268_v63, %v1601_v4  ;;  %v766_v61 = vmul.f32 %v1284_v10, %v713_v40 }
 0x114   : > { %v1269_v15 = vpop.f32.mrb[10].mxu0  ;;  %v1285_v62 = vpop.f32.mrb[10].mxu1  ;;  %v748_v21 = vmul.f32 %v1597_v2, %v453_v11  ;;  %v764_v22 = vmul.f32 %v1614_v18, %v517_v12 }
 0x115   : > { %v751_v13 = vmul.f32 %v1269_v15, %v1599_v3  ;;  %v767_v16 = vmul.f32 %v1285_v62, %v718_v39  ;;  %v456_v19 = vpop.f32.mrb[11].mxu0  ;;  %v520_v20 = vpop.f32.mrb[11].mxu1 }
 0x116   : > { %v749_v23 = vmul.f32 %v1595_v1, %v456_v19  ;;  %v765_v24 = vmul.f32 %v1612_v17, %v520_v20  ;;  %v738_v3 = vpop.permute.xlu1 %737  ;;  %v733_v28 = vpop.permute.xlu0 %732 }
 0x117   : > { %v1151_v25 = vpack.c.bf16 %v751_v13, %v750_v14  ;;  %v1191_v4 = vpack.c.bf16 %v767_v16, %v766_v61 }
 0x118   : > { %v1146_v26 = vpack.c.bf16 %v749_v23, %v748_v21  ;;  %v1186_v27 = vpack.c.bf16 %v765_v24, %v764_v22 }
 0x119   : > { %1207 = vst [vmem:[%s1618_s6 + $0x28] sm:$0xff] %v1151_v25   ;;  %1215 = vst [vmem:[%s1618_s6 + $0x68] sm:$0xff] %v1191_v4  }
 0x11a   : > { %1206 = vst [vmem:[%s1618_s6 + $0x20] sm:$0xff] %v1146_v26   ;;  %1214 = vst [vmem:[%s1618_s6 + $0x60] sm:$0xff] %v1186_v27   ;;  %v1272_v29 = vpop.f32.mrb[12].mxu0  ;;  %v1288_v2 = vpop.f32.mrb[12].mxu1 }
 0x11b   : > { %v469_v30 = vpop.f32.mrb[13].mxu0  ;;  %v533_v18 = vpop.f32.mrb[13].mxu1  ;;  %v754_v17 = vmul.f32 %v1272_v29, %v1609_v8  ;;  %v770_v32 = vmul.f32 %v1288_v2, %v733_v28 }
 0x11c   : > { %v1273_v31 = vpop.f32.mrb[14].mxu0  ;;  %v1289_v1 = vpop.f32.mrb[14].mxu1  ;;  %v752_v37 = vmul.f32 %v1605_v6, %v469_v30  ;;  %v768_v38 = vmul.f32 %v723_v0, %v533_v18 }
 0x11d   : > { %v755_v33 = vmul.f32 %v1273_v31, %v1607_v7  ;;  %v771_v34 = vmul.f32 %v1289_v1, %v738_v3  ;;  %v472_v35 = vpop.f32.mrb[15].mxu0  ;;  %v536_v36 = vpop.f32.mrb[15].mxu1 }
 0x11e   : > { %v753_v39 = vmul.f32 %v1603_v5, %v472_v35  ;;  %v769_v40 = vmul.f32 %v728_v9, %v536_v36 }
 0x11f   : > { %v1161_v41 = vpack.c.bf16 %v755_v33, %v754_v17  ;;  %v1201_v8 = vpack.c.bf16 %v771_v34, %v770_v32 }
 0x120   : > { %v1156_v7 = vpack.c.bf16 %v753_v39, %v752_v37  ;;  %v1196_v42 = vpack.c.bf16 %v769_v40, %v768_v38 }
 0x121   : > { %1209 = vst [vmem:[%s1618_s6 + $0x38] sm:$0xff] %v1161_v41   ;;  %1217 = vst [vmem:[%s1618_s6 + $0x78] sm:$0xff] %v1201_v8  }
 0x122   : > { %1208 = vst [vmem:[%s1618_s6 + $0x30] sm:$0xff] %v1156_v7   ;;  %1216 = vst [vmem:[%s1618_s6 + $0x70] sm:$0xff] %v1196_v42  }
 0x123   : > { %1387 = shalt.err (!%p1384_p3)
}
 0x124   : > { %s1388_s25 = scalar_lea.hbm %s1648_s10, 2048  ;;  %s1392_s28 = scalar_lea.hbm %s1702_s3, 4096 }
 0x125   : > { %p1389_p4 = scmp.ne.s32.totalorder %s1648_s10, %s1388_s25  ;;  %p1393_p9 = scmp.lt.u32.totalorder %s1648_s10, %s1702_s3 }
 0x126   : > { %p1394_p10 = scmp.lt.u32.totalorder %s1392_s28, %s1388_s25  ;;  %p1396_p12 = scmp.lt.u32.totalorder %s1388_s25, %s1648_s10 }
 0x127   : > { %p1390_p7 = pnand %p1389_p4, %p1500_p5 }
 0x128   : > { %p1395_p11 = por %p1394_p10, %p1393_p9 }
 0x129   : > { %p1391_p8 = pneg %p1390_p7 }
 0x12a   : > { %p1397_p13 = por %p1396_p12, %p1395_p11 }
 0x12c   : > { %p1398_p0 = pnand %p1397_p13, %p1391_p8 }
 0x12e   : > { %1401 = shalt.err (!%p1398_p0)
}
 0x12f   : > { %s1440_s4 = smov 64   ;;  %s1441_s5 = smov 4  }
 0x130   : > { %1306 = dma.vmem_to_hbm [thread:$0]  (%p1500_p5), %s1650_s8, 2048, %s1648_s10, %s1658_s11, %s1440_s4, %s1440_s4, %s1441_s5  }
 0x131 PF: > { %p1312_p1 = scmp.ge.s32.totalorder %s1436_s15, 2  ;;  %s961_s6 = sand.u32 1, %s1424_s12  }
 0x132   : > { %s962_s7 = scalar_lea.sflag [#allocation3], %s961_s6 }
 0x133   : > { %p1309_p2 = pnand %p1312_p1, %p1504_p6 }
 0x135   : > { %1419 = dma.done.wait (!%p1309_p2), %s962_s7, 2048  }
 0x136   : > { %1421 = vsyncadd (!%p1309_p2), %s962_s7, 4294965248  ;;  %p13_p3 = scmp.ge.s32.totalorder %s1487_s18, 4   ;;  %s1705_s12 = smov %s1428_s13 }
 0x137   : > { %s1706_s13 = smov %s1432_s14  ;;  %s1707_s14 = smov %s1498_s21 }
 0x138   : > { %s1708_s15 = smov %s1487_s18  ;;  %15 = sbr.rel (!%p13_p3) target bundleno = 3 (0x3), region = 70 }
 0x13f   :  { %967 = vsyncpa [#allocation3], 1 }
 0x140   :  { %969 = vsyncpa [#allocation3 + $0x1], 1 }

</bundles_post_ra>
